<compile_context>
chip_gen: v6e
topology: v6e:2x2x1
jax: 0.10.0
libtpu: 0.0.40
codegen_flags: <defaults>
</compile_context>

<pallas_src>
import jax
import jax.numpy as jnp
from jax.experimental import pallas as pl
from jax.experimental.pallas import tpu as pltpu


def shortcut_conv_kernel(x_ref, m_ref, b_ref, o_ref):
    """One batch element per grid step.

    x_ref: (1, H, W*C)    input rows, NHWC flattened (channels fastest on lanes)
    m_ref: (3, W*C, W*C)  banded row-conv matrices for dy = -1, 0, +1
    b_ref: (1, W*C)       conv bias tiled across W
    o_ref: (1, H, W*C)    output = x + conv3x3(x) + bias
    """
    H = x_ref.shape[1]

    x = x_ref[0].astype(jnp.float32)                       # (H, W*C)

    # Vertical (dy) halo: shift rows via the XLU and zero the wrapped row.
    row = jax.lax.broadcasted_iota(jnp.int32, x.shape, 0)
    zero = jnp.zeros_like(x)
    x_dn = jnp.where(row == 0, zero, pltpu.roll(x, 1, 0))        # x[h-1]
    x_up = jnp.where(row == H - 1, zero, pltpu.roll(x, H - 1, 0))  # x[h+1]

    # 3x3 conv == sum over dy of a banded (W*C, W*C) matmul per image row.
    # Horizontal zero-padding is baked into the band matrices.
    acc = jnp.dot(x_dn, m_ref[0], preferred_element_type=jnp.float32)
    acc = acc + jnp.dot(x, m_ref[1], preferred_element_type=jnp.float32)
    acc = acc + jnp.dot(x_up, m_ref[2], preferred_element_type=jnp.float32)

    # Residual + bias, all in f32, single lane-dense store.
    o_ref[0] = (x + acc + b_ref[0].astype(jnp.float32)).astype(o_ref.dtype)


def _build_row_band_matrices(weight, W):
    """weight: (C_out, C_in, 3, 3) PyTorch OIHW.  Returns (3, W*C_in, W*C_out).

    M[dy][w_in*C_in + ci, w_out*C_out + co] = weight[co, ci, dy, w_in - w_out + 1]
    for |w_in - w_out| <= 1, else 0 (this encodes the horizontal zero pad).
    Built once per weight; reused for every batch/grid step.
    """
    C_out, C_in = weight.shape[0], weight.shape[1]
    w_in = jnp.arange(W)[:, None]                       # (W, 1)
    w_out = jnp.arange(W)[None, :]                      # (1, W)
    dx = w_in - w_out + 1                               # (W, W)
    valid = (dx >= 0) & (dx <= 2)
    dx_c = jnp.clip(dx, 0, 2)

    taps = jnp.transpose(weight, (2, 1, 0, 3))          # (3, C_in, C_out, 3)
    m = taps[:, :, :, dx_c]                             # (3, C_in, C_out, W, W)
    m = jnp.where(valid[None, None, None, :, :], m, 0.0)
    m = jnp.transpose(m, (0, 3, 1, 4, 2))               # (3, W_in, C_in, W_out, C_out)
    return m.reshape(3, W * C_in, W * C_out)


def shortcut_block(x_nchw, weight, bias):
    """x_nchw: (N, C, H, W) float32 — PyTorch layout.
    weight:   (C, C, 3, 3)          — PyTorch Conv2d OIHW layout.
    bias:     (C,)
    Returns (N, C, H, W): x + conv3x3(x) + bias.
    """
    N, C, H, W = x_nchw.shape
    assert weight.shape == (C, C, 3, 3), "ShortcutBlock needs C_out == C_in"
    WC = W * C

    # NCHW -> NHWC, each image row flattened to W*C lanes (channels fastest).
    x = jnp.transpose(x_nchw, (0, 2, 3, 1)).reshape(N, H, WC)
    m = _build_row_band_matrices(weight, W)             # (3, WC, WC)
    b = jnp.tile(bias, W).reshape(1, WC)                # matches w*C + co layout

    # TODO(synk): for large H*W*C (v7x's 64 MiB VMEM) add a row-tile grid axis
    # with halo handling so each tile stays well under the scoped VMEM limit.
    out = pl.pallas_call(
        shortcut_conv_kernel,
        out_shape=jax.ShapeDtypeStruct((N, H, WC), x.dtype),
        grid_spec=pltpu.PrefetchScalarGridSpec(
            num_scalar_prefetch=0,
            grid=(N,),
            in_specs=[
                pl.BlockSpec((1, H, WC), lambda n: (n, 0, 0)),
                pl.BlockSpec((3, WC, WC), lambda n: (0, 0, 0)),
                pl.BlockSpec((1, WC), lambda n: (0, 0)),
            ],
            out_specs=pl.BlockSpec((1, H, WC), lambda n: (n, 0, 0)),
        ),
        compiler_params=pltpu.CompilerParams(
            dimension_semantics=("parallel",)),
    )(x, m, b)

    return jnp.transpose(out.reshape(N, H, W, C), (0, 3, 1, 2))


def _reference(x_nchw, weight, bias):
    """Pure-JAX reference: x + Conv2d(x, weight, bias, padding=1)."""
    conv = jax.lax.conv_general_dilated(
        x_nchw, weight, window_strides=(1, 1), padding="SAME",
        dimension_numbers=("NCHW", "OIHW", "NCHW"))
    return x_nchw + conv + bias.reshape(1, -1, 1, 1)


if __name__ == "__main__":
    key = jax.random.PRNGKey(0)
    k_x, k_w, k_b = jax.random.split(key, 3)

    N, C, H, W = 2, 4, 16, 16
    x = jax.random.normal(k_x, (N, C, H, W), dtype=jnp.float32)
    weight = jax.random.normal(k_w, (C, C, 3, 3), dtype=jnp.float32) * 0.1
    bias = jax.random.normal(k_b, (C,), dtype=jnp.float32) * 0.1

    out = shortcut_block(x, weight, bias)
    out = jax.block_until_ready(out)

    ref = _reference(x, weight, bias)
    assert out.shape == (N, C, H, W)
    assert jnp.allclose(out, ref, atol=1e-4, rtol=1e-4)

    print("KERNEL_OK")
</pallas_src>

<mosaic_0001>
module attributes {stable_mosaic.version = 11 : i64} {
  func.func @shortcut_conv_kernel(%arg0: i32, %arg1: memref<1x16x64xf32, #tpu.memory_space<vmem>>, %arg2: memref<3x64x64xf32, #tpu.memory_space<vmem>>, %arg3: memref<1x64xf32, #tpu.memory_space<vmem>>, %arg4: memref<1x16x64xf32, #tpu.memory_space<vmem>>) attributes {dimension_semantics = [#tpu.dimension_semantics<parallel>], iteration_bounds = array<i64: 2>, scalar_prefetch = 0 : i64, scratch_operands = 0 : i64, tpu.core_type = #tpu.core_type<tc>, window_params = [{transform_indices = @transform_0, window_bounds = array<i64: 1, 16, 64>}, {pipeline_mode = #tpu.pipeline_mode<synchronous>, transform_indices = @transform_1, window_bounds = array<i64: 3, 64, 64>}, {pipeline_mode = #tpu.pipeline_mode<synchronous>, transform_indices = @transform_2, window_bounds = array<i64: 1, 64>}, {transform_indices = @transform_3, window_bounds = array<i64: 1, 16, 64>}]} {
    %c0 = arith.constant 0 : index
    %c0_0 = arith.constant 0 : index
    %c0_1 = arith.constant 0 : index
    %0 = vector.load %arg1[%c0, %c0_0, %c0_1] : memref<1x16x64xf32, #tpu.memory_space<vmem>>, vector<1x16x64xf32>
    %1 = vector.shape_cast %0 : vector<1x16x64xf32> to vector<16x64xf32>
    %2 = tpu.iota {dimensions = array<i32: 0>} : vector<16x64xi32>
    %cst = arith.constant 0.000000e+00 : f32
    %3 = vector.broadcast %cst : f32 to vector<16x64xf32>
    %c0_i32 = arith.constant 0 : i32
    %4 = vector.broadcast %c0_i32 : i32 to vector<16x64xi32>
    %5 = arith.cmpi eq, %2, %4 : vector<16x64xi32>
    %c1_i32 = arith.constant 1 : i32
    %6 = tpu.dynamic_rotate %1 by %c1_i32 dim 0 : vector<16x64xf32>, i32 -> vector<16x64xf32>
    %7 = arith.select %5, %3, %6 : vector<16x64xi1>, vector<16x64xf32>
    %c15_i32 = arith.constant 15 : i32
    %8 = vector.broadcast %c15_i32 : i32 to vector<16x64xi32>
    %9 = arith.cmpi eq, %2, %8 : vector<16x64xi32>
    %c15_i32_2 = arith.constant 15 : i32
    %10 = tpu.dynamic_rotate %1 by %c15_i32_2 dim 0 : vector<16x64xf32>, i32 -> vector<16x64xf32>
    %11 = arith.select %9, %3, %10 : vector<16x64xi1>, vector<16x64xf32>
    %c0_3 = arith.constant 0 : index
    %c0_4 = arith.constant 0 : index
    %c0_5 = arith.constant 0 : index
    %12 = vector.load %arg2[%c0_3, %c0_4, %c0_5] : memref<3x64x64xf32, #tpu.memory_space<vmem>>, vector<1x64x64xf32>
    %13 = vector.shape_cast %12 : vector<1x64x64xf32> to vector<64x64xf32>
    %cst_6 = arith.constant dense<0.000000e+00> : vector<16x64xf32>
    %14 = tpu.matmul %7, %13, %cst_6 {dimension_numbers = #tpu.dot_dimension_numbers<[1], [0], [0], [1], [0, 0, 1, 1], [], []>} : vector<16x64xf32>, vector<64x64xf32>, vector<16x64xf32> -> vector<16x64xf32>
    %c1 = arith.constant 1 : index
    %c0_7 = arith.constant 0 : index
    %c0_8 = arith.constant 0 : index
    %15 = vector.load %arg2[%c1, %c0_7, %c0_8] : memref<3x64x64xf32, #tpu.memory_space<vmem>>, vector<1x64x64xf32>
    %16 = vector.shape_cast %15 : vector<1x64x64xf32> to vector<64x64xf32>
    %cst_9 = arith.constant dense<0.000000e+00> : vector<16x64xf32>
    %17 = tpu.matmul %1, %16, %cst_9 {dimension_numbers = #tpu.dot_dimension_numbers<[1], [0], [0], [1], [0, 0, 1, 1], [], []>} : vector<16x64xf32>, vector<64x64xf32>, vector<16x64xf32> -> vector<16x64xf32>
    %18 = arith.addf %14, %17 : vector<16x64xf32>
    %c2 = arith.constant 2 : index
    %c0_10 = arith.constant 0 : index
    %c0_11 = arith.constant 0 : index
    %19 = vector.load %arg2[%c2, %c0_10, %c0_11] : memref<3x64x64xf32, #tpu.memory_space<vmem>>, vector<1x64x64xf32>
    %20 = vector.shape_cast %19 : vector<1x64x64xf32> to vector<64x64xf32>
    %cst_12 = arith.constant dense<0.000000e+00> : vector<16x64xf32>
    %21 = tpu.matmul %11, %20, %cst_12 {dimension_numbers = #tpu.dot_dimension_numbers<[1], [0], [0], [1], [0, 0, 1, 1], [], []>} : vector<16x64xf32>, vector<64x64xf32>, vector<16x64xf32> -> vector<16x64xf32>
    %22 = arith.addf %18, %21 : vector<16x64xf32>
    %23 = arith.addf %1, %22 : vector<16x64xf32>
    %c0_13 = arith.constant 0 : index
    %c0_14 = arith.constant 0 : index
    %24 = vector.load %arg3[%c0_13, %c0_14] : memref<1x64xf32, #tpu.memory_space<vmem>>, vector<1x64xf32>
    %25 = vector.shape_cast %24 : vector<1x64xf32> to vector<64xf32>
    %26 = vector.shape_cast %25 : vector<64xf32> to vector<1x64xf32>
    %27 = vector.broadcast %26 : vector<1x64xf32> to vector<16x64xf32>
    %28 = arith.addf %23, %27 : vector<16x64xf32>
    %c0_15 = arith.constant 0 : index
    %c0_16 = arith.constant 0 : index
    %c0_17 = arith.constant 0 : index
    %29 = vector.load %arg4[%c0_15, %c0_16, %c0_17] : memref<1x16x64xf32, #tpu.memory_space<vmem>>, vector<1x16x64xf32>
    %30 = vector.shape_cast %29 : vector<1x16x64xf32> to vector<16x64xf32>
    %31 = vector.shape_cast %28 : vector<16x64xf32> to vector<1x16x64xf32>
    tpu.vector_store %arg4[%c0_15, %c0_16, %c0_17], %31 {strides = array<i32>} : memref<1x16x64xf32, #tpu.memory_space<vmem>>, vector<1x16x64xf32>,
    return
  }
  func.func @transform_0(%arg0: i32) -> (i32, i32, i32) {
    %c0_i32 = arith.constant 0 : i32
    %c0_i32_0 = arith.constant 0 : i32
    %c0_i32_1 = arith.constant 0 : i32
    return %arg0, %c0_i32, %c0_i32_0 : i32, i32, i32
  }
  func.func @transform_1(%arg0: i32) -> (i32, i32, i32) {
    %c0_i32 = arith.constant 0 : i32
    %c0_i32_0 = arith.constant 0 : i32
    %c0_i32_1 = arith.constant 0 : i32
    %c0_i32_2 = arith.constant 0 : i32
    return %c0_i32, %c0_i32_0, %c0_i32_1 : i32, i32, i32
  }
  func.func @transform_2(%arg0: i32) -> (i32, i32) {
    %c0_i32 = arith.constant 0 : i32
    %c0_i32_0 = arith.constant 0 : i32
    %c0_i32_1 = arith.constant 0 : i32
    return %c0_i32, %c0_i32_0 : i32, i32
  }
  func.func @transform_3(%arg0: i32) -> (i32, i32, i32) {
    %c0_i32 = arith.constant 0 : i32
    %c0_i32_0 = arith.constant 0 : i32
    %c0_i32_1 = arith.constant 0 : i32
    return %arg0, %c0_i32, %c0_i32_0 : i32, i32, i32
  }
}

</mosaic_0001>

<bundles_post_ra>
// kernel: tpu_custom_call.1
= control target key start
LH: loop header
LB: loop body
LE: loop exit
PB: predicated region body
PF: predicated region fallthrough
CT: control target
= control target key end

     0   :  { %8 = vsyncpa [#allocation3], 0  ;;  %s1157_s0 = inlined_call_operand.hbm [shape: f32[2,16,64], index: 0, kind: input, shape index: {}]   ;;  %s1158_s1 = inlined_call_operand.hbm [shape: f32[3,64,64], index: 1, kind: input, shape index: {}]   ;;  %s1159_s2 = inlined_call_operand.vmem [shape: f32[1,64], index: 2, kind: input, shape index: {}]   ;;  %s1160_s3 = inlined_call_operand.hbm [shape: f32[2,16,64], index: 3, kind: output, shape index: {}]  }
   0x1   :  { %10 = vsyncpa [#allocation3 + $0x1], 0 }
   0x2   :  { %11 = vsyncpa [#allocation6], 0 }
   0x3   :  { %12 = vsyncpa [#allocation4], 0 }
   0x4   :  { %14 = vsyncpa [#allocation4 + $0x1], 0  ;;  %s933_s12 = smov 0   ;;  %s935_s13 = smov 0  }
   0x5   :  { %s937_s14 = smov 0   ;;  %s939_s15 = smov 0  }
   0x6 LB: > { %s954_s16 = sadd.s32 4294967295, %s904_s15   ;;  %s609_s17 = sadd.s32 4294967294, %s904_s15   ;;  %s904_s15 = sphi %s939_s15, %s1182_s15   ;;  %s900_s14 = sphi %s937_s14, %s1181_s14   ;;  %s896_s13 = sphi %s935_s13, %s1180_s13   ;;  %s892_s12 = sphi %s933_s12, %s1179_s12  }
   0x7   : > { %p40_p0 = scmp.ne.s32.totalorder %s896_s13, %s892_s12  ;;  %p1161_p1 = scmp.eq.s32.totalorder %s954_s16, 0 }
   0x8   : > { %p112_p3 = scmp.eq.s32.totalorder %s609_s17, 1  ;;  %p610_p5 = scmp.ge.s32.totalorder %s904_s15, 1 }
   0x9   : > { %p963_p4 = por %p1161_p1, %p40_p0  ;;  %p119_p7 = scmp.lt.s32.totalorder %s904_s15, 3 }
   0xa   : > { %p968_p6 = por %p112_p3, %p40_p0  ;;  %s906_s21 = smov [#allocation5]  }
   0xb   : > { %s1165_s18 = scalar_select %p963_p4, 1, 0 }
   0xc   : > { %s1166_s19 = scalar_select %p968_p6, 1, 0 }
   0xd   : > { %p973_p8 = pnand %p610_p5, %p119_p7  ;;  %s131_s22 = sshll.u32 %s906_s21, 4  ;;  %s132_s22 = int_to_ptr.vmem [resolvable:$true] %s131_s22 }
   0xe   : > { %s987_s24 = sadd.s32 1, %s904_s15   ;;  %s27_s25 = sadd.s32 1, %s900_s14 }
   0xf   : > { %s1167_s20 = scalar_select %p973_p8, 1, 0 }
  0x10   : > { %p729_p9 = pneg %p973_p8  ;;  %s24_s26 = ssub.s32 %s904_s15, %s987_s24 }
  0x11   : > { %s793_s27 = scalar_lea.vmem %s132_s22, 3072  ;;  %p801_p5 = scmp.lt.s32.totalorder %s132_s22, %s132_s22 }
  0x12   : > { %p982_p11 = pnand %p729_p9, %p1161_p1  ;;  %p794_p13 = scmp.ne.s32.totalorder %s132_s22, %s793_s27 }
  0x13   : > { %p802_p7 = scmp.lt.s32.totalorder %s793_s27, %s793_s27 }
  0x14   : > { %p784_p12 = pneg %p982_p11 }
  0x15   : > { %p803_p10 = por %p802_p7, %p801_p5 }
  0x16   : > { %p796_p0 = pnand %p794_p13, %p784_p12 }
  0x18   : > { %p797_p3 = pneg %p796_p0 }
  0x1a   : > { %p804_p2 = pnand %p803_p10, %p797_p3 }
  0x1c   : > { %807 = shalt.err (!%p804_p2)
}
  0x1d   : > { %s907_s28 = smov 128   ;;  %s908_s29 = smov 8  }
  0x1e   : > { %732 = dma.hbm_to_vmem [thread:$0]  (!%p982_p11), %s1158_s1, 3072, %s132_s22, [#allocation6], %s907_s28, %s907_s28, %s908_s29  }
  0x1f   : > { %p25_p2 = scmp.eq.s32.totalorder %s24_s26, 0  ;;  %p34_p9 = scmp.ne.s32.totalorder %s900_s14, %s896_s13 }
  0x20   : > { %p35_p10 = scmp.eq.s32.totalorder %s904_s15, 0  ;;  %p742_p12 = scmp.lt.s32.totalorder %s904_s15, 2 }
  0x21   : > { %s1007_s5 = scalar_select %p25_p2, %s900_s14, %s27_s25  }
  0x22   : > { %p36_p13 = por %p35_p10, %p34_p9  ;;  %p1169_p0 = scmp.eq.s32.totalorder %s954_s16, 1 }
  0x23   : > { %s148_s7 = sand.u32 1, %s900_s14   ;;  %s632_s8 = sshll.u32 %s904_s15, 8 }
  0x24   : > { %p1011_p3 = por %p1169_p0, %p34_p9  ;;  %s613_s9 = sshll.u32 %s148_s7, 4 }
  0x25   : > { %s1020_s17 = scalar_lea.hbm %s1157_s0, %s632_s8  ;;  %s152_s21 = scalar_lea.vmem [#allocation2], %s613_s9 }
  0x26   : > { %s1170_s6 = scalar_select %p1011_p3, 1, 0 }
  0x27   : > { %s159_s22 = sshll.u32 %s152_s21, 4  ;;  %p1022_p11 = pnand %p742_p12, %p36_p13  ;;  %s1026_s22 = int_to_ptr.vmem [resolvable:$true] %s159_s22 }
  0x28   : > { %s1028_s25 = scalar_lea.sflag [#allocation3], %s148_s7  ;;  %s808_s26 = scalar_lea.hbm %s1020_s17, 256 }
  0x29   : > { %p809_p5 = scmp.ne.s32.totalorder %s1020_s17, %s808_s26  ;;  %p810_p7 = pneg %p1022_p11 }
  0x2a   : > { %s813_s4 = scalar_lea.hbm %s1157_s0, 512  ;;  %p814_p10 = scmp.lt.s32.totalorder %s1020_s17, %s1157_s0 }
  0x2b   : > { %p811_p2 = pnand %p810_p7, %p809_p5  ;;  %p815_p12 = scmp.lt.s32.totalorder %s813_s4, %s808_s26 }
  0x2d   : > { %p812_p9 = pneg %p811_p2  ;;  %p816_p13 = por %p815_p12, %p814_p10 }
  0x2f   : > { %p817_p0 = pnand %p816_p13, %p812_p9 }
  0x31   : > { %820 = shalt.err (!%p817_p0)
}
  0x32   : > { %s821_s7 = scalar_lea.vmem %s1026_s22, 256  ;;  %s909_s10 = smov [#allocation2]  }
  0x33   : > { %p822_p1 = scmp.ne.s32.totalorder %s1026_s22, %s821_s7  ;;  %s826_s11 = sshll.u32 %s909_s10, 4  ;;  %s827_s11 = int_to_ptr.vmem [resolvable:$false] %s826_s11 }
  0x34   : > { %s828_s21 = scalar_lea.vmem %s827_s11, 512  ;;  %p829_p2 = scmp.lt.s32.totalorder %s1026_s22, %s827_s11 }
  0x35   : > { %p824_p6 = pnand %p822_p1, %p810_p7  ;;  %p830_p3 = scmp.lt.s32.totalorder %s828_s21, %s821_s7 }
  0x37   : > { %p825_p5 = pneg %p824_p6  ;;  %p831_p4 = por %p830_p3, %p829_p2 }
  0x39   : > { %p832_p8 = pnand %p831_p4, %p825_p5 }
  0x3b   : > { %835 = shalt.err (!%p832_p8)
}
  0x3c   : > { %736 = dma.hbm_to_vmem [thread:$0]  (!%p1022_p11), %s1020_s17, 256, %s1026_s22, %s1028_s25, %s907_s28, %s907_s28, %s908_s29  }
  0x3d   : > { %p1172_p1 = scmp.ne.s32.totalorder %s1167_s20, 0 }
  0x3e   : > { %s1055_s26 = sand.u32 (!%p1172_p1), 1, %s896_s13   ;;  %p1173_p4 = scmp.ne.s32.totalorder (!%p1172_p1), %s1165_s18, 0 }
  0x3f   : > { %171 = sbr.rel (%p1172_p1) target bundleno = 322 (0x142), region = 32  ;;  %s617_s27 = sshll.u32 (!%p1172_p1), %s1055_s26, 4 }
  0x40   : > { %s174_s30 = scalar_lea.sflag (!%p1172_p1), [#allocation3], %s1055_s26  ;;  %s177_s23 = scalar_lea.vmem (!%p1172_p1), [#allocation2], %s617_s27 }
  0x44   : > { %879 = dma.done.wait (%p1173_p4), %s174_s30, 256  }
  0x45   : > { %881 = vsyncadd (%p1173_p4), %s174_s30, 4294967040  ;;  %p1174_p6 = scmp.eq.s32.totalorder %s954_s16, 0 }
  0x47   : > { %883 = dma.done.wait (%p1174_p6), [#allocation6], 3072   ;;  %p1175_p8 = pmov %p1174_p6 }
  0x48   : > { %v243_v0 = vld [vmem:[#allocation5 + $0x78] sm:$0xff]  ;;  %v242_v2 = vld [vmem:[#allocation5 + $0x70] sm:$0xff]  ;;  %v206_v3 = vlaneseq  ;;  %v241_v5 = vld [vmem:[#allocation5 + $0x68] sm:$0xff]  ;;  %vm244_vm2 = vcmask 523264   ;;  %s633_s28 = sshll.u32 %s954_s16, 8  ;;  %s203_s29 = scalar_lea.vmem [#allocation7], %s617_s27 }
  0x49   : > { %885 = vsyncadd (%p1175_p8), [#allocation6], 4294964224  ;;  %v234_v1 = vld [vmem:[#allocation5 + $0x38] sm:$0xff]  ;;  %664 = vmatprep.subr.mxu0 %v243_v0  ;;  %v233_v4 = vld [vmem:[#allocation5 + $0x30] sm:$0xff]  ;;  %s526_s17 = sshll.u32 %s203_s29, 4  ;;  %s1110_s4 = scalar_lea.hbm %s1160_s3, %s633_s28  ;;  %s1112_s17 = int_to_ptr.vmem [resolvable:$true] %s526_s17 }
  0x4a   : > { %683 = vmatprep.subr.mxu1 %v234_v1  ;;  %665 = vmatpush3.msra.mxu0 %v243_v0  ;;  %v232_v6 = vld [vmem:[#allocation5 + $0x28] sm:$0xff]  ;;  %v240_v7 = vld [vmem:[#allocation5 + $0x60] sm:$0xff]  ;;  %v1069_v9 = vshrl.u32 %v206_v3, 7  ;;  %v239_v12 = vld [vmem:[#allocation5 + $0x58] sm:$0xff]  ;;  %s513_s16 = scalar_lea.sflag [#allocation4], %s1055_s26  ;;  %s836_s8 = scalar_lea.vmem %s1112_s17, 256 }
  0x4b   : > { %684 = vmatpush3.msra.mxu1 %v234_v1  ;;  %666 = vmatprep.subr.mxu0 %v242_v2  ;;  %v231_v8 = vld [vmem:[#allocation5 + $0x20] sm:$0xff]  ;;  %v1073_v11 = vld [vmem:[%s177_s23 + $0x8] sm:$0xff]  ;;  %v238_v16 = vld [vmem:[#allocation5 + $0x50] sm:$0xff]  ;;  %p837_p3 = scmp.ne.s32.totalorder %s1112_s17, %s836_s8  ;;  %p1176_p11 = scmp.ne.s32.totalorder %s1170_s6, 0 }
  0x4c   : > { %685 = vmatprep.subr.mxu1 %v233_v4  ;;  %667 = vmatpush3.msra.mxu0 %v242_v2  ;;  %v1071_v10 = vld [vmem:[%s177_s23] sm:$0xff]  ;;  %v230_v13 = vld [vmem:[#allocation5 + $0x18] sm:$0xff]  ;;  %v212_v15 = vrot.slane %v1073_v11, 7  ;;  %vm213_vm0 = vcmp.lt.s32.totalorder %v1069_v9, 1  ;;  %v237_v18 = vld [vmem:[#allocation5 + $0x48] sm:$0xff]  ;;  %vm209_vm1 = vcmp.eq.s32.totalorder %v1069_v9, 0 }
  0x4d   : > { %686 = vmatpush3.msra.mxu1 %v233_v4  ;;  %668 = vmatprep.subr.mxu0 %v241_v5  ;;  %v211_v14 = vrot.slane %v1071_v10, 7  ;;  %v229_v17 = vld [vmem:[#allocation5 + $0x10] sm:$0xff]  ;;  %v228_v19 = vld [vmem:[#allocation5 + $0x8] sm:$0xff]  ;;  %v236_v21 = vld [vmem:[#allocation5 + $0x40] sm:$0xff]  ;;  %v220_v23 = vrot.slane %v1071_v10, 1  ;;  %v221_v24 = vrot.slane %v1073_v11, 1  ;;  %p838_p7 = pnand %p837_p3, %p1176_p11 }
  0x4e   : > { %687 = vmatprep.subr.mxu1 %v232_v6  ;;  %669 = vmatpush3.msra.mxu0 %v241_v5  ;;  %v227_v22 = vld [vmem:[#allocation5] sm:$0xff]  ;;  %vm222_vm3 = vcmp.lt.s32.totalorder %v1069_v9, 7  ;;  %v415_v27 = vld [vmem:[#allocation5 + $0xb8] sm:$0xff]  ;;  %v414_v29 = vld [vmem:[#allocation5 + $0xb0] sm:$0xff]  ;;  %v208_v33 = vadd.s32 8, %v1069_v9  ;;  %s910_s9 = smov [#allocation7]  }
  0x4f   : > { %688 = vmatpush3.msra.mxu1 %v232_v6  ;;  %670 = vmatprep.subr.mxu0 %v240_v7  ;;  %v215_v20 = vsel %vm213_vm0, %v212_v15, %v211_v14  ;;  %v214_v26 = vsel %vm213_vm0, %v211_v14, %v212_v15  ;;  %v223_v28 = vsel %vm222_vm3, %v220_v23, %v221_v24  ;;  %v413_v30 = vld [vmem:[#allocation5 + $0xa8] sm:$0xff]  ;;  %v412_v31 = vld [vmem:[#allocation5 + $0xa0] sm:$0xff]  ;;  %v411_v32 = vld [vmem:[#allocation5 + $0x98] sm:$0xff]  ;;  %p839_p9 = pneg %p838_p7  ;;  %s840_s7 = sshll.u32 %s910_s9, 4  ;;  %s841_s7 = int_to_ptr.vmem [resolvable:$false] %s840_s7 }
  0x50   : > { %689 = vmatprep.subr.mxu1 %v231_v8  ;;  %671 = vmatpush3.msra.mxu0 %v240_v7  ;;  %v216_v25 = vsel %vm209_vm1, 0.0, %v215_v20  ;;  %v410_v34 = vld [vmem:[#allocation5 + $0x90] sm:$0xff]  ;;  %v409_v35 = vld [vmem:[#allocation5 + $0x88] sm:$0xff]  ;;  %vm219_vm4 = vcmp.eq.s32.totalorder %v208_v33, 15  ;;  %v224_v36 = vsel %vm222_vm3, %v221_v24, %v220_v23  ;;  %v408_v37 = vld [vmem:[#allocation5 + $0x80] sm:$0xff]  ;;  %s842_s10 = scalar_lea.vmem %s841_s7, 512  ;;  %p843_p10 = scmp.lt.s32.totalorder %s1112_s17, %s841_s7 }
  0x51   : > { %690 = vmatpush3.msra.mxu1 %v231_v8  ;;  %672 = vmatprep.subr.mxu0 %v239_v12  ;;  %v226_v38 = vsel %vm219_vm4, 0.0, %v224_v36  ;;  %v626_v47 = vld [vmem:[%s1159_s2] ss:$0 sm:$0xff]  ;;  %p844_p12 = scmp.lt.s32.totalorder %s842_s10, %s836_s8 }
  0x52   : > { %691 = vmatprep.subr.mxu1 %v230_v13  ;;  %673 = vmatpush3.msra.mxu0 %v239_v12 }
  0x53   : > { %692 = vmatpush3.msra.mxu1 %v230_v13  ;;  %674 = vmatprep.subr.mxu0 %v238_v16  ;;  %p845_p13 = por %p844_p12, %p843_p10 }
  0x54   : > { %693 = vmatprep.subr.mxu1 %v229_v17  ;;  %675 = vmatpush3.msra.mxu0 %v238_v16 }
  0x55   : > { %694 = vmatpush3.msra.mxu1 %v229_v17  ;;  %676 = vmatprep.subr.mxu0 %v237_v18  ;;  %p846_p0 = pnand %p845_p13, %p839_p9 }
  0x56   : > { %695 = vmatprep.subr.mxu1 %v228_v19  ;;  %677 = vmatpush3.msra.mxu0 %v237_v18 }
  0x57   : > { %696 = vmatpush3.msra.mxu1 %v228_v19  ;;  %678 = vmatprep.subr.mxu0 %v236_v21 }
  0x58   : > { %697 = vmatprep.subr.mxu1 %v227_v22  ;;  %679 = vmatpush3.msra.mxu0 %v236_v21 }
  0x59   : > { %680 = vmatprep.mubr.msk.f32.mxu0 %vm244_vm2, %v1071_v10  ;;  %698 = vmatpush3.msra.mxu1 %v227_v22 }
  0x5a   : > { %699 = vmatprep.mubr.msk.f32.mxu1 %vm244_vm2, %v216_v25  ;;  %681 = vmatmul.mubr.msk.f32.vlgmr.msra.gmra.mxu0 %vm244_vm2, %v1073_v11 }
  0x5b   : > { %700 = vmatmul.mubr.msk.f32.vlgmr.msra.gmra.mxu1 %vm244_vm2, %v214_v26  ;;  %702 = vmatprep.subr.mxu0 %v415_v27 }
  0x5c   : > { %718 = vmatprep.mubr.msk.f32.mxu0 %vm244_vm2, %v223_v28  ;;  %703 = vmatpush3.msra.mxu0 %v415_v27 }
  0x5d   : > { %704 = vmatprep.subr.mxu0 %v414_v29 }
  0x5e   : > { %705 = vmatpush3.msra.mxu0 %v414_v29 }
  0x5f   : > { %706 = vmatprep.subr.mxu0 %v413_v30 }
  0x60   : > { %707 = vmatpush3.msra.mxu0 %v413_v30 }
  0x61   : > { %708 = vmatprep.subr.mxu0 %v412_v31 }
  0x62   : > { %709 = vmatpush3.msra.mxu0 %v412_v31 }
  0x63   : > { %710 = vmatprep.subr.mxu0 %v411_v32 }
  0x64   : > { %711 = vmatpush3.msra.mxu0 %v411_v32 }
  0x65   : > { %712 = vmatprep.subr.mxu0 %v410_v34 }
  0x66   : > { %713 = vmatpush3.msra.mxu0 %v410_v34 }
  0x67   : > { %714 = vmatprep.subr.mxu0 %v409_v35 }
  0x68   : > { %715 = vmatpush3.msra.mxu0 %v409_v35 }
  0x69   : > { %716 = vmatprep.subr.mxu0 %v408_v37 }
  0x6a   : > { %717 = vmatpush3.msra.mxu0 %v408_v37 }
  0x6b   : > { %719 = vmatmul.mubr.msk.f32.vlgmr.msra.gmra.mxu0 %vm244_vm2, %v226_v38 }
 0x11a   : > { %v682_v39 = vpop.f32.mrf.mxu0 }
 0x11b   : > { %v701_v40 = vpop.f32.mrf.mxu1 }
 0x11c   : > { %v317_v41 = vpop.f32.mrf.mxu0  ;;  %v404_v43 = vadd.f32 %v701_v40, %v682_v39 }
 0x11d   : > { %v398_v42 = vpop.f32.mrf.mxu1 }
 0x11e   : > { %v399_v45 = vadd.f32 %v398_v42, %v317_v41 }
 0x12b   : > { %v720_v44 = vpop.f32.mrf.mxu0 }
 0x12c   : > { %v498_v46 = vadd.f32 %v720_v44, %v404_v43 }
 0x12d   : > { %v488_v48 = vpop.f32.mrf.mxu0 }
 0x12e   : > { %v500_v49 = vadd.f32 %v498_v46, %v1073_v11  ;;  %v497_v50 = vadd.f32 %v488_v48, %v399_v45 }
 0x130   : > { %v509_v51 = vadd.f32 %v626_v47, %v500_v49  ;;  %v499_v52 = vadd.f32 %v497_v50, %v1071_v10 }
 0x132   : > { %511 = vst.msk [vmem:[%s203_s29 + $0x8] sm:$0xff] %vm244_vm2, %v509_v51  ;;  %v508_v53 = vadd.f32 %v626_v47, %v499_v52 }
 0x134   : > { %510 = vst.msk [vmem:[%s203_s29] sm:$0xff] %vm244_vm2, %v508_v53 }
 0x135   : > { %849 = shalt.err (!%p846_p0)
}
 0x136   : > { %s850_s11 = scalar_lea.hbm %s1110_s4, 256  ;;  %s854_s30 = scalar_lea.hbm %s1160_s3, 512 }
 0x137   : > { %p851_p5 = scmp.ne.s32.totalorder %s1110_s4, %s850_s11  ;;  %p855_p4 = scmp.lt.s32.totalorder %s1110_s4, %s1160_s3 }
 0x138   : > { %p856_p6 = scmp.lt.s32.totalorder %s854_s30, %s850_s11 }
 0x139   : > { %p852_p2 = pnand %p851_p5, %p1176_p11 }
 0x13a   : > { %p857_p8 = por %p856_p6, %p855_p4 }
 0x13b   : > { %p853_p1 = pneg %p852_p2 }
 0x13d   : > { %p858_p3 = pnand %p857_p8, %p853_p1 }
 0x13f   : > { %861 = shalt.err (!%p858_p3)
}
 0x140   : > { %s911_s20 = smov 128   ;;  %s912_s28 = smov 8  }
 0x141   : > { %727 = dma.vmem_to_hbm [thread:$0]  (%p1176_p11), %s1112_s17, 256, %s1110_s4, %s513_s16, %s911_s20, %s911_s20, %s912_s28  }
 0x142 PF: > { %s541_s29 = sand.u32 1, %s892_s12   ;;  %p1177_p7 = scmp.ne.s32.totalorder %s1166_s19, 0 }
 0x143   : > { %p1178_p9 = scmp.ge.s32.totalorder %s904_s15, 2  ;;  %s542_s22 = scalar_lea.sflag [#allocation4], %s541_s29 }
 0x145   : > { %p738_p10 = pnand %p1178_p9, %p1177_p7 }
 0x147   : > { %p739_p12 = pneg %p738_p10 }
 0x149   : > { %887 = dma.done.wait (%p739_p12), %s542_s22, 256  }
 0x14a   : > { %889 = vsyncadd (%p739_p12), %s542_s22, 4294967040  ;;  %p17_p13 = scmp.ge.s32.totalorder %s987_s24, 4   ;;  %s1179_s12 = smov %s896_s13 }
 0x14b   : > { %s1180_s13 = smov %s900_s14  ;;  %s1181_s14 = smov %s1007_s5 }
 0x14c   : > { %s1182_s15 = smov %s987_s24  ;;  %19 = sbr.rel (!%p17_p13) target bundleno = 6 (0x6), region = 83 }
 0x151   :  { %547 = vsyncpa [#allocation3], 1 }
 0x152   :  { %549 = vsyncpa [#allocation3 + $0x1], 1 }
 0x153   :  { %550 = vsyncpa [#allocation6], 1 }
 0x154   :  { %551 = vsyncpa [#allocation4], 1 }
 0x155   :  { %553 = vsyncpa [#allocation4 + $0x1], 1 }

</bundles_post_ra>
